<compile_context>
chip_gen: v6e
topology: v6e:2x2x1
jax: 0.10.0
libtpu: 0.0.40
codegen_flags: <defaults>
</compile_context>

<pallas_src>
import functools

import jax
import jax.numpy as jnp
from jax.experimental import pallas as pl
from jax.experimental.pallas import tpu as pltpu


def _round_up(n, m):
    return ((n + m - 1) // m) * m


def _mlp_kernel(num_linear, compute_dtype, *refs):
    """refs = (x_ref, w0, b0, w1, b1, ..., w_{L-1}, b_{L-1}, out_ref).

    x_ref:   (TB, F0p)       compute_dtype
    w_i:     (Fip, F(i+1)p)  compute_dtype   (lane-padded, pre-transposed to (in, out))
    b_i:     (1, F(i+1)p)    float32         (lane-padded)
    out_ref: (TB, FLp)       float32
    """
    x_ref = refs[0]
    out_ref = refs[-1]
    params = refs[1:-1]

    # TODO(synk): nn.Dropout(p=0.3) (applied to the input and after every tanh) is
    # stochastic train-mode behaviour; implemented as identity (eval-mode semantics).
    h = x_ref[...]
    for i in range(num_linear):
        if i != 0:
            h = jnp.tanh(h)  # f32 VPU/EUP math
        w = params[2 * i][...]
        b = params[2 * i + 1][...].astype(jnp.float32)
        # Tall-M (TB rows) x narrow K/N matmul on the MXU, f32 accumulation.
        h = jnp.dot(h.astype(compute_dtype), w,
                    preferred_element_type=jnp.float32) + b
    # Epilogue sigmoid in f32; hidden under the output DMA.
    out_ref[...] = jax.nn.sigmoid(h).astype(out_ref.dtype)


def nnet_forward(x, weights, biases, *, block_rows=512,
                 compute_dtype=jnp.bfloat16, lane=128):
    """Pallas forward pass of NNet (eval mode).

    x:        (B, in_feats) float32
    weights:  list of (in_i, out_i) float32  (already transposed vs. PyTorch nn.Linear)
    biases:   list of (out_i,) or (1, out_i) float32
    """
    assert len(weights) == len(biases)
    num_linear = len(weights)
    B, in_feats = x.shape
    n_classes = weights[-1].shape[1]

    # Lane-pad every feature dim to a multiple of 128.
    dims = [in_feats] + [w.shape[1] for w in weights]
    pdims = [_round_up(d, lane) for d in dims]

    # Batch tile: multiple of 8 sublanes; pad B up to a multiple of TB.
    TB = max(8, (int(block_rows) // 8) * 8)
    B_pad = _round_up(B, TB)
    grid = (pl.cdiv(B_pad, TB),)

    # Zero-pad + cast x in one shot (rows -> B_pad, lanes -> pdims[0]).
    x_pad = jnp.zeros((B_pad, pdims[0]), compute_dtype).at[:B, :in_feats].set(
        x.astype(compute_dtype))

    args = [x_pad]
    in_specs = [pl.BlockSpec((TB, pdims[0]), lambda i: (i, 0))]

    for li, (w, b) in enumerate(zip(weights, biases)):
        fi, fo = w.shape
        b2 = jnp.reshape(b, (1, fo))
        w_pad = jnp.zeros((pdims[li], pdims[li + 1]), compute_dtype).at[:fi, :fo].set(
            w.astype(compute_dtype))
        b_pad = jnp.zeros((1, pdims[li + 1]), jnp.float32).at[:, :fo].set(
            b2.astype(jnp.float32))
        args += [w_pad, b_pad]
        # Constant index_map -> weights/biases stay resident in VMEM across grid steps.
        in_specs.append(pl.BlockSpec(w_pad.shape, lambda i: (0, 0)))
        in_specs.append(pl.BlockSpec(b_pad.shape, lambda i: (0, 0)))

    kernel = functools.partial(_mlp_kernel, num_linear, compute_dtype)

    out_pad = pl.pallas_call(
        kernel,
        grid=grid,
        in_specs=in_specs,
        out_specs=pl.BlockSpec((TB, pdims[-1]), lambda i: (i, 0)),
        out_shape=jax.ShapeDtypeStruct((B_pad, pdims[-1]), jnp.float32),
        compiler_params=pltpu.CompilerParams(
            dimension_semantics=("parallel",)),  # megacore split of batch axis on v7x
    )(*args)

    # Drop padded rows and padded output lanes (padded lanes hold sigmoid(0)=0.5 junk).
    return out_pad[:B, :n_classes]


if __name__ == "__main__":
    # Small shapes consistent with the module: NNet(in_feats, n_classes, n_hidden, n_layers)
    in_feats, n_classes, n_hidden, n_layers = 32, 2, 32, 2
    B = 512  # batch of embeddings; tiled with TB=128 -> grid=(4,) to exercise pipelining

    dims = [in_feats] + [n_hidden] * n_layers + [n_classes]
    num_linear = n_layers + 1  # first layer + (n_layers-1) hidden + output layer

    key = jax.random.PRNGKey(0)
    keys = jax.random.split(key, 2 * num_linear + 1)

    weights, biases = [], []
    for li in range(num_linear):
        fan_in, fan_out = dims[li], dims[li + 1]
        bound = 1.0 / float(fan_in) ** 0.5  # PyTorch nn.Linear default init range
        weights.append(jax.random.uniform(
            keys[2 * li], (fan_in, fan_out), jnp.float32, minval=-bound, maxval=bound))
        biases.append(jax.random.uniform(
            keys[2 * li + 1], (fan_out,), jnp.float32, minval=-bound, maxval=bound))

    x = jax.random.normal(keys[-1], (B, in_feats), dtype=jnp.float32)

    out = nnet_forward(x, weights, biases, block_rows=128)
    out = jax.block_until_ready(out)

    # Pure-JAX f32 reference (dropout = identity in eval mode).
    h = x
    for i in range(num_linear):
        if i != 0:
            h = jnp.tanh(h)
        h = h @ weights[i] + biases[i][None, :]
    ref = jax.nn.sigmoid(h)

    assert out.shape == (B, n_classes)
    # Kernel uses bf16 matmul inputs (f32 accumulation); tolerance sized for bf16 error.
    assert jnp.allclose(out, ref, atol=2e-2, rtol=2e-2), "mismatch vs reference"
    print("KERNEL_OK")
</pallas_src>

<mosaic_0001>
module attributes {stable_mosaic.version = 11 : i64} {
  func.func @_mlp_kernel(%arg0: i32, %arg1: memref<128x128xbf16, #tpu.memory_space<vmem>>, %arg2: memref<128x128xbf16, #tpu.memory_space<vmem>>, %arg3: memref<1x128xf32, #tpu.memory_space<vmem>>, %arg4: memref<128x128xbf16, #tpu.memory_space<vmem>>, %arg5: memref<1x128xf32, #tpu.memory_space<vmem>>, %arg6: memref<128x128xbf16, #tpu.memory_space<vmem>>, %arg7: memref<1x128xf32, #tpu.memory_space<vmem>>, %arg8: memref<128x128xf32, #tpu.memory_space<vmem>>) attributes {dimension_semantics = [#tpu.dimension_semantics<parallel>], iteration_bounds = array<i64: 4>, scalar_prefetch = 0 : i64, scratch_operands = 0 : i64, tpu.core_type = #tpu.core_type<tc>, window_params = [{transform_indices = @transform_0, window_bounds = array<i64: 128, 128>}, {pipeline_mode = #tpu.pipeline_mode<synchronous>, transform_indices = @transform_1, window_bounds = array<i64: 128, 128>}, {pipeline_mode = #tpu.pipeline_mode<synchronous>, transform_indices = @transform_2, window_bounds = array<i64: 1, 128>}, {pipeline_mode = #tpu.pipeline_mode<synchronous>, transform_indices = @transform_3, window_bounds = array<i64: 128, 128>}, {pipeline_mode = #tpu.pipeline_mode<synchronous>, transform_indices = @transform_4, window_bounds = array<i64: 1, 128>}, {pipeline_mode = #tpu.pipeline_mode<synchronous>, transform_indices = @transform_5, window_bounds = array<i64: 128, 128>}, {pipeline_mode = #tpu.pipeline_mode<synchronous>, transform_indices = @transform_6, window_bounds = array<i64: 1, 128>}, {transform_indices = @transform_7, window_bounds = array<i64: 128, 128>}]} {
    %c0 = arith.constant 0 : index
    %c0_0 = arith.constant 0 : index
    %0 = vector.load %arg1[%c0, %c0_0] : memref<128x128xbf16, #tpu.memory_space<vmem>>, vector<128x128xbf16>
    %c0_1 = arith.constant 0 : index
    %c0_2 = arith.constant 0 : index
    %1 = vector.load %arg2[%c0_1, %c0_2] : memref<128x128xbf16, #tpu.memory_space<vmem>>, vector<128x128xbf16>
    %c0_3 = arith.constant 0 : index
    %c0_4 = arith.constant 0 : index
    %2 = vector.load %arg3[%c0_3, %c0_4] : memref<1x128xf32, #tpu.memory_space<vmem>>, vector<1x128xf32>
    %cst = arith.constant dense<0.000000e+00> : vector<128x128xf32>
    %3 = tpu.matmul %0, %1, %cst {dimension_numbers = #tpu.dot_dimension_numbers<[1], [0], [0], [1], [0, 0, 1, 1], [], []>} : vector<128x128xbf16>, vector<128x128xbf16>, vector<128x128xf32> -> vector<128x128xf32>
    %4 = vector.broadcast %2 : vector<1x128xf32> to vector<128x128xf32>
    %5 = arith.addf %3, %4 : vector<128x128xf32>
    %6 = math.tanh %5 : vector<128x128xf32>
    %c0_5 = arith.constant 0 : index
    %c0_6 = arith.constant 0 : index
    %7 = vector.load %arg4[%c0_5, %c0_6] : memref<128x128xbf16, #tpu.memory_space<vmem>>, vector<128x128xbf16>
    %c0_7 = arith.constant 0 : index
    %c0_8 = arith.constant 0 : index
    %8 = vector.load %arg5[%c0_7, %c0_8] : memref<1x128xf32, #tpu.memory_space<vmem>>, vector<1x128xf32>
    %9 = arith.truncf %6 : vector<128x128xf32> to vector<128x128xbf16>
    %cst_9 = arith.constant dense<0.000000e+00> : vector<128x128xf32>
    %10 = tpu.matmul %9, %7, %cst_9 {dimension_numbers = #tpu.dot_dimension_numbers<[1], [0], [0], [1], [0, 0, 1, 1], [], []>} : vector<128x128xbf16>, vector<128x128xbf16>, vector<128x128xf32> -> vector<128x128xf32>
    %11 = vector.broadcast %8 : vector<1x128xf32> to vector<128x128xf32>
    %12 = arith.addf %10, %11 : vector<128x128xf32>
    %13 = math.tanh %12 : vector<128x128xf32>
    %c0_10 = arith.constant 0 : index
    %c0_11 = arith.constant 0 : index
    %14 = vector.load %arg6[%c0_10, %c0_11] : memref<128x128xbf16, #tpu.memory_space<vmem>>, vector<128x128xbf16>
    %c0_12 = arith.constant 0 : index
    %c0_13 = arith.constant 0 : index
    %15 = vector.load %arg7[%c0_12, %c0_13] : memref<1x128xf32, #tpu.memory_space<vmem>>, vector<1x128xf32>
    %16 = arith.truncf %13 : vector<128x128xf32> to vector<128x128xbf16>
    %cst_14 = arith.constant dense<0.000000e+00> : vector<128x128xf32>
    %17 = tpu.matmul %16, %14, %cst_14 {dimension_numbers = #tpu.dot_dimension_numbers<[1], [0], [0], [1], [0, 0, 1, 1], [], []>} : vector<128x128xbf16>, vector<128x128xbf16>, vector<128x128xf32> -> vector<128x128xf32>
    %18 = vector.broadcast %15 : vector<1x128xf32> to vector<128x128xf32>
    %19 = arith.addf %17, %18 : vector<128x128xf32>
    %20 = arith.negf %19 : vector<128x128xf32>
    %21 = math.exp %20 : vector<128x128xf32>
    %cst_15 = arith.constant 1.000000e+00 : f32
    %22 = vector.broadcast %cst_15 : f32 to vector<128x128xf32>
    %23 = arith.addf %22, %21 : vector<128x128xf32>
    %24 = arith.divf %22, %23 : vector<128x128xf32>
    %c0_16 = arith.constant 0 : index
    %c0_17 = arith.constant 0 : index
    %25 = vector.load %arg8[%c0_16, %c0_17] : memref<128x128xf32, #tpu.memory_space<vmem>>, vector<128x128xf32>
    tpu.vector_store %arg8[%c0_16, %c0_17], %24 {strides = array<i32>} : memref<128x128xf32, #tpu.memory_space<vmem>>, vector<128x128xf32>,
    return
  }
  func.func @transform_0(%arg0: i32) -> (i32, i32) {
    %c0_i32 = arith.constant 0 : i32
    %c0_i32_0 = arith.constant 0 : i32
    return %arg0, %c0_i32 : i32, i32
  }
  func.func @transform_1(%arg0: i32) -> (i32, i32) {
    %c0_i32 = arith.constant 0 : i32
    %c0_i32_0 = arith.constant 0 : i32
    %c0_i32_1 = arith.constant 0 : i32
    return %c0_i32, %c0_i32_0 : i32, i32
  }
  func.func @transform_2(%arg0: i32) -> (i32, i32) {
    %c0_i32 = arith.constant 0 : i32
    %c0_i32_0 = arith.constant 0 : i32
    %c0_i32_1 = arith.constant 0 : i32
    return %c0_i32, %c0_i32_0 : i32, i32
  }
  func.func @transform_3(%arg0: i32) -> (i32, i32) {
    %c0_i32 = arith.constant 0 : i32
    %c0_i32_0 = arith.constant 0 : i32
    %c0_i32_1 = arith.constant 0 : i32
    return %c0_i32, %c0_i32_0 : i32, i32
  }
  func.func @transform_4(%arg0: i32) -> (i32, i32) {
    %c0_i32 = arith.constant 0 : i32
    %c0_i32_0 = arith.constant 0 : i32
    %c0_i32_1 = arith.constant 0 : i32
    return %c0_i32, %c0_i32_0 : i32, i32
  }
  func.func @transform_5(%arg0: i32) -> (i32, i32) {
    %c0_i32 = arith.constant 0 : i32
    %c0_i32_0 = arith.constant 0 : i32
    %c0_i32_1 = arith.constant 0 : i32
    return %c0_i32, %c0_i32_0 : i32, i32
  }
  func.func @transform_6(%arg0: i32) -> (i32, i32) {
    %c0_i32 = arith.constant 0 : i32
    %c0_i32_0 = arith.constant 0 : i32
    %c0_i32_1 = arith.constant 0 : i32
    return %c0_i32, %c0_i32_0 : i32, i32
  }
  func.func @transform_7(%arg0: i32) -> (i32, i32) {
    %c0_i32 = arith.constant 0 : i32
    %c0_i32_0 = arith.constant 0 : i32
    return %arg0, %c0_i32 : i32, i32
  }
}

</mosaic_0001>

<bundles_post_ra>
// kernel: tpu_custom_call.1
= control target key start
LH: loop header
LB: loop body
LE: loop exit
PB: predicated region body
PF: predicated region fallthrough
CT: control target
= control target key end

     0   :  { %s2164_s0 = inlined_call_operand.hbm [shape: bf16[512,128], index: 0, kind: input, shape index: {}]   ;;  %s2165_s1 = inlined_call_operand.hbm [shape: bf16[128,128], index: 1, kind: input, shape index: {}]   ;;  %s2166_s2 = inlined_call_operand.vmem [shape: f32[1,128], index: 2, kind: input, shape index: {}]   ;;  %s2167_s3 = inlined_call_operand.hbm [shape: bf16[128,128], index: 3, kind: input, shape index: {}]   ;;  %s2168_s4 = inlined_call_operand.vmem [shape: f32[1,128], index: 4, kind: input, shape index: {}]   ;;  %s2169_s5 = inlined_call_operand.hbm [shape: bf16[128,128], index: 5, kind: input, shape index: {}]   ;;  %s2170_s6 = inlined_call_operand.vmem [shape: f32[1,128], index: 6, kind: input, shape index: {}]   ;;  %s2171_s7 = inlined_call_operand.hbm [shape: f32[512,128], index: 7, kind: output, shape index: {}]  }
   0x1   :  { %2178 = sst [smem:[#allocation15_spill]] %s2165_s1 }
   0x2   :  { %12 = vsyncpa [#allocation3], 0 }
   0x3   :  { %14 = vsyncpa [#allocation3 + $0x1], 0 }
   0x4   :  { %15 = vsyncpa [#allocation6], 0 }
   0x5   :  { %16 = vsyncpa [#allocation9], 0 }
   0x6   :  { %17 = vsyncpa [#allocation4], 0 }
   0x7   :  { %19 = vsyncpa [#allocation4 + $0x1], 0  ;;  %s1891_s24 = smov 0   ;;  %s1893_s25 = smov 0  }
   0x8   :  { %s1895_s26 = smov 0   ;;  %s1897_s27 = smov 0  }
   0x9 LB: > { %s1912_s28 = sadd.s32 4294967295, %s1840_s27   ;;  %s1188_s29 = sadd.s32 4294967294, %s1840_s27   ;;  %s1840_s27 = sphi %s1897_s27, %s2199_s27   ;;  %s1836_s26 = sphi %s1895_s26, %s2198_s26   ;;  %s1832_s25 = sphi %s1893_s25, %s2197_s25   ;;  %s1828_s24 = sphi %s1891_s24, %s2196_s24  }
   0xa   : > { %p45_p0 = scmp.ne.s32.totalorder %s1832_s25, %s1828_s24  ;;  %p2172_p1 = scmp.eq.s32.totalorder %s1912_s28, 0 }
   0xb   : > { %p195_p2 = scmp.eq.s32.totalorder %s1912_s28, 3  ;;  %p201_p3 = scmp.eq.s32.totalorder %s1188_s29, 3 }
   0xc   : > { %p1921_p4 = por %p2172_p1, %p45_p0  ;;  %p1189_p5 = scmp.ge.s32.totalorder %s1840_s27, 1 }
   0xd   : > { %p1926_p6 = por %p201_p3, %p45_p0  ;;  %p208_p7 = scmp.lt.s32.totalorder %s1840_s27, 5 }
   0xe   : > { %s2179_s30 = scalar_select %p1921_p4, 1, 0 }
   0xf   : > { %s2180_s8 = scalar_select %p1926_p6, 1, 0 }
  0x10   : > { %p1931_p8 = pnand %p1189_p5, %p208_p7  ;;  %s1842_s10 = smov [#allocation5]  }
  0x11   : > { %s220_s11 = sshll.u32 %s1842_s10, 4  ;;  %s1843_s13 = smov [#allocation7]   ;;  %s221_s11 = int_to_ptr.vmem [resolvable:$true] %s220_s11 }
  0x12   : > { %s2181_s9 = scalar_select %p1931_p8, 1, 0 }
  0x13   : > { %p1437_p9 = pneg %p1931_p8  ;;  %s236_s14 = sshll.u32 %s1843_s13, 4  ;;  %s237_s14 = int_to_ptr.vmem [resolvable:$true] %s236_s14 }
  0x14   : > { %s1844_s15 = smov [#allocation8]   ;;  %s1673_s17 = scalar_lea.vmem %s221_s11, 1024 }
  0x15   : > { %p1939_p10 = pnand %p1437_p9, %p2172_p1  ;;  %s252_s16 = sshll.u32 %s1844_s15, 4  ;;  %s253_s16 = int_to_ptr.vmem [resolvable:$true] %s252_s16 }
  0x16   : > { %p1674_p12 = scmp.ne.s32.totalorder %s221_s11, %s1673_s17  ;;  %p1681_p3 = scmp.lt.s32.totalorder %s221_s11, %s221_s11 }
  0x17   : > { %p1664_p11 = pneg %p1939_p10  ;;  %p1682_p5 = scmp.lt.s32.totalorder %s1673_s17, %s1673_s17 }
  0x19   : > { %p1676_p13 = pnand %p1674_p12, %p1664_p11  ;;  %p1683_p7 = por %p1682_p5, %p1681_p3 }
  0x1b   : > { %p1677_p0 = pneg %p1676_p13 }
  0x1d   : > { %p1684_p9 = pnand %p1683_p7, %p1677_p0 }
  0x1f   : > { %1687 = shalt.err (!%p1684_p9)
}
  0x20   : > { %s2173_s18 = smov 64   ;;  %s2174_s19 = smov 4  }
  0x21   : > { %s2183_s1 = sld [smem:[#allocation15_spill]]  ;;  %s1699_s22 = scalar_lea.vmem %s237_s14, 1024 }
  0x22   : > { %p1700_p12 = scmp.ne.s32.totalorder %s237_s14, %s1699_s22  ;;  %p1707_p0 = scmp.lt.s32.totalorder %s237_s14, %s237_s14 }
  0x23   : > { %p1708_p5 = scmp.lt.s32.totalorder %s1699_s22, %s1699_s22 }
  0x24   : > { %p1702_p13 = pnand %p1700_p12, %p1664_p11 }
  0x25   : > { %p1709_p7 = por %p1708_p5, %p1707_p0 }
  0x26   : > { %p1703_p3 = pneg %p1702_p13 }
  0x27   : > { %1440 = dma.hbm_to_vmem [thread:$0]  (!%p1939_p10), %s2183_s1, 1024, %s221_s11, [#allocation6], %s2173_s18, %s2173_s18, %s2174_s19  }
  0x28   : > { %p1710_p9 = pnand %p1709_p7, %p1703_p3 }
  0x2a   : > { %1713 = shalt.err (!%p1710_p9)
}
  0x2b   : > { %1443 = dma.hbm_to_vmem [thread:$0]  (!%p1939_p10), %s2167_s3, 1024, %s237_s14, [#allocation6], %s2173_s18, %s2173_s18, %s2174_s19  }
  0x2c   : > { %s1725_s10 = scalar_lea.vmem %s253_s16, 1024  ;;  %p1733_p0 = scmp.lt.s32.totalorder %s253_s16, %s253_s16 }
  0x2d   : > { %p1726_p1 = scmp.ne.s32.totalorder %s253_s16, %s1725_s10  ;;  %p1734_p3 = scmp.lt.s32.totalorder %s1725_s10, %s1725_s10 }
  0x2f   : > { %p1728_p12 = pnand %p1726_p1, %p1664_p11  ;;  %p1735_p5 = por %p1734_p3, %p1733_p0 }
  0x31   : > { %p1729_p13 = pneg %p1728_p12 }
  0x33   : > { %p1736_p7 = pnand %p1735_p5, %p1729_p13 }
  0x35   : > { %1739 = shalt.err (!%p1736_p7)
}
  0x36   : > { %1446 = dma.hbm_to_vmem [thread:$0]  (!%p1939_p10), %s2169_s5, 1024, %s253_s16, [#allocation9], %s2173_s18, %s2173_s18, %s2174_s19  }
  0x37   : > { %s1979_s14 = sadd.s32 1, %s1840_s27   ;;  %s32_s15 = sadd.s32 1, %s1836_s26 }
  0x38   : > { %s29_s12 = ssub.s32 %s1840_s27, %s1979_s14  ;;  %p39_p11 = scmp.ne.s32.totalorder %s1836_s26, %s1832_s25 }
  0x39   : > { %p30_p1 = scmp.eq.s32.totalorder %s29_s12, 0  ;;  %p40_p9 = scmp.eq.s32.totalorder %s1840_s27, 0 }
  0x3a   : > { %p1458_p12 = scmp.lt.s32.totalorder %s1840_s27, 4  ;;  %p1993_p0 = por %p195_p2, %p39_p11 }
  0x3b   : > { %s1989_s17 = scalar_select %p30_p1, %s1836_s26, %s32_s15  }
  0x3c   : > { %p41_p13 = por %p40_p9, %p39_p11  ;;  %s269_s21 = sand.u32 1, %s1836_s26  }
  0x3d   : > { %s2184_s20 = scalar_select %p1993_p0, 1, 0 }
  0x3e   : > { %s1259_s22 = sshll.u32 %s1840_s27, 10  ;;  %s1194_s16 = sshll.u32 %s269_s21, 6 }
  0x3f   : > { %s2002_s10 = scalar_lea.hbm %s2164_s0, %s1259_s22  ;;  %s273_s11 = scalar_lea.vmem [#allocation2], %s1194_s16 }
  0x40   : > { %s280_s13 = sshll.u32 %s273_s11, 4  ;;  %p2004_p10 = pnand %p1458_p12, %p41_p13  ;;  %s2008_s13 = int_to_ptr.vmem [resolvable:$true] %s280_s13 }
  0x41   : > { %s2010_s15 = scalar_lea.sflag [#allocation3], %s269_s21  ;;  %s1740_s18 = scalar_lea.hbm %s2002_s10, 1024 }
  0x42   : > { %p1741_p2 = scmp.ne.s32.totalorder %s2002_s10, %s1740_s18  ;;  %p1742_p3 = pneg %p2004_p10 }
  0x43   : > { %s1745_s16 = scalar_lea.hbm %s2164_s0, 4096  ;;  %p1746_p1 = scmp.lt.s32.totalorder %s2002_s10, %s2164_s0 }
  0x44   : > { %p1743_p5 = pnand %p1742_p3, %p1741_p2  ;;  %p1747_p11 = scmp.lt.s32.totalorder %s1745_s16, %s1740_s18 }
  0x46   : > { %p1744_p7 = pneg %p1743_p5  ;;  %p1748_p9 = por %p1747_p11, %p1746_p1 }
  0x48   : > { %p1749_p12 = pnand %p1748_p9, %p1744_p7 }
  0x4a   : > { %1752 = shalt.err (!%p1749_p12)
}
  0x4b   : > { %s1753_s21 = scalar_lea.vmem %s2008_s13, 1024  ;;  %s1847_s19 = smov [#allocation2]  }
  0x4c   : > { %p1754_p13 = scmp.ne.s32.totalorder %s2008_s13, %s1753_s21  ;;  %s1758_s1 = sshll.u32 %s1847_s19, 4  ;;  %s1759_s1 = int_to_ptr.vmem [resolvable:$false] %s1758_s1 }
  0x4d   : > { %s1760_s22 = scalar_lea.vmem %s1759_s1, 2048  ;;  %p1761_p5 = scmp.lt.s32.totalorder %s2008_s13, %s1759_s1 }
  0x4e   : > { %p1756_p6 = pnand %p1754_p13, %p1742_p3  ;;  %p1762_p0 = scmp.lt.s32.totalorder %s1760_s22, %s1753_s21 }
  0x50   : > { %p1757_p2 = pneg %p1756_p6  ;;  %p1763_p4 = por %p1762_p0, %p1761_p5 }
  0x52   : > { %p1764_p8 = pnand %p1763_p4, %p1757_p2 }
  0x54   : > { %1767 = shalt.err (!%p1764_p8)
}
  0x55   : > { %s2186_s18 = smov 4   ;;  %s2187_s23 = smov 64  }
  0x56   : > { %1450 = dma.hbm_to_vmem [thread:$0]  (!%p2004_p10), %s2002_s10, 1024, %s2008_s13, %s2010_s15, %s2187_s23, %s2187_s23, %s2186_s18  }
  0x57   : > { %p2188_p6 = scmp.ne.s32.totalorder %s2181_s9, 0 }
  0x58   : > { %s2037_s19 = sand.u32 (!%p2188_p6), 1, %s1832_s25   ;;  %p2189_p4 = scmp.ne.s32.totalorder (!%p2188_p6), %s2179_s30, 0 }
  0x59   : > { %292 = sbr.rel (%p2188_p6) target bundleno = 843 (0x34b), region = 48  ;;  %s1198_s1 = sshll.u32 (!%p2188_p6), %s2037_s19, 6 }
  0x5a   : > { %s295_s16 = scalar_lea.sflag (!%p2188_p6), [#allocation3], %s2037_s19  ;;  %s2041_s29 = scalar_lea.vmem (!%p2188_p6), [#allocation2], %s1198_s1 }
  0x5e   : > { %1811 = dma.done.wait (%p2189_p4), %s295_s16, 1024  }
  0x5f   : > { %1813 = vsyncadd (%p2189_p4), %s295_s16, 4294966272  ;;  %p2190_p8 = scmp.eq.s32.totalorder %s1912_s28, 0 }
  0x61   : > { %1815 = dma.done.wait (%p2190_p8), [#allocation6], 2048   ;;  %p2191_p0 = pmov %p2190_p8 }
  0x63   : > { %1817 = vsyncadd (%p2191_p0), [#allocation6], 4294965248  ;;  %p2192_p10 = pmov %p2191_p0 }
  0x64   : > { %p2193_p3 = pmov %p2191_p0 }
  0x65   : > { %1819 = dma.done.wait (%p2192_p10), [#allocation9], 1024  }
  0x66   : > { %1821 = vsyncadd (%p2193_p3), [#allocation9], 4294966272  ;;  %v1502_v0 = vld [vmem:[#allocation5 + $0x38] sm:$0xff]   ;;  %v1503_v1 = vld [vmem:[#allocation5 + $0x30] sm:$0xff]   ;;  %s1202_s11 = sshll.u32 %s2037_s19, 7  ;;  %s1260_s22 = sshll.u32 %s1912_s28, 11 }
  0x67   : > { %1309 = vmatprep.subr.bf16.mxu0 %v1502_v0  ;;  %v1504_v2 = vld [vmem:[#allocation5 + $0x28] sm:$0xff]   ;;  %v1505_v3 = vld [vmem:[#allocation5 + $0x20] sm:$0xff]   ;;  %v1506_v5 = vld [vmem:[#allocation5 + $0x18] sm:$0xff]   ;;  %s2097_s21 = scalar_lea.vmem [#allocation10], %s1202_s11  ;;  %s2118_s16 = scalar_lea.hbm %s2171_s7, %s1260_s22 }
  0x68   : > { %1310 = vmatpush3.bf16.msra.mxu0 %v1502_v0  ;;  %v1510_v4 = vld [vmem:[%s2041_s29] sm:$0xff]   ;;  %v1507_v6 = vld [vmem:[#allocation5 + $0x10] sm:$0xff]   ;;  %v1518_v7 = vld [vmem:[#allocation7 + $0x38] sm:$0xff]   ;;  %s1086_s18 = sshll.u32 %s2097_s21, 4  ;;  %p2194_p1 = scmp.ne.s32.totalorder %s2184_s20, 0  ;;  %s2120_s18 = int_to_ptr.vmem [resolvable:$true] %s1086_s18 }
  0x69   : > { %1311 = vmatprep.subr.bf16.mxu0 %v1503_v1  ;;  %1325 = vmatprep.mubr.bf16.mxu0 %v1510_v4  ;;  %v1519_v8 = vld [vmem:[#allocation7 + $0x30] sm:$0xff]   ;;  %v1508_v9 = vld [vmem:[#allocation5 + $0x8] sm:$0xff]   ;;  %v1509_v10 = vld [vmem:[#allocation5] sm:$0xff]   ;;  %s1768_s30 = scalar_lea.vmem %s2120_s18, 2048  ;;  %s1848_s28 = smov [#allocation10]  }
  0x6a   : > { %1341 = vmatprep.subr.bf16.mxu1 %v1518_v7  ;;  %v1511_v11 = vld [vmem:[%s2041_s29 + $0x8] sm:$0xff]   ;;  %v1512_v12 = vld [vmem:[%s2041_s29 + $0x10] sm:$0xff]   ;;  %v1513_v13 = vld [vmem:[%s2041_s29 + $0x18] sm:$0xff]   ;;  %p1769_p7 = scmp.ne.s32.totalorder %s2120_s18, %s1768_s30  ;;  %s1772_s9 = sshll.u32 %s1848_s28, 4  ;;  %s1773_s9 = int_to_ptr.vmem [resolvable:$false] %s1772_s9 }
  0x6b   : > { %1342 = vmatpush3.bf16.msra.mxu1 %v1518_v7  ;;  %v1514_v14 = vld [vmem:[%s2041_s29 + $0x20] sm:$0xff]   ;;  %v1515_v15 = vld [vmem:[%s2041_s29 + $0x28] sm:$0xff]   ;;  %v1516_v16 = vld [vmem:[%s2041_s29 + $0x30] sm:$0xff]   ;;  %s1774_s10 = scalar_lea.vmem %s1773_s9, 4096  ;;  %p1775_p12 = scmp.lt.s32.totalorder %s2120_s18, %s1773_s9 }
  0x6c   : > { %1312 = vmatpush3.bf16.msra.mxu0 %v1503_v1  ;;  %1343 = vmatprep.subr.bf16.mxu1 %v1519_v8  ;;  %v1517_v17 = vld [vmem:[%s2041_s29 + $0x38] sm:$0xff]   ;;  %v1520_v18 = vld [vmem:[#allocation7 + $0x28] sm:$0xff]   ;;  %v1521_v19 = vld [vmem:[#allocation7 + $0x20] sm:$0xff]   ;;  %s1073_s29 = scalar_lea.sflag [#allocation4], %s2037_s19  ;;  %p1770_p11 = pnand %p1769_p7, %p2194_p1 }
  0x6d   : > { %1313 = vmatprep.subr.bf16.mxu0 %v1504_v2  ;;  %v1522_v20 = vld [vmem:[#allocation7 + $0x18] sm:$0xff]   ;;  %v1523_v21 = vld [vmem:[#allocation7 + $0x10] sm:$0xff]   ;;  %v1524_v22 = vld [vmem:[#allocation7 + $0x8] sm:$0xff]   ;;  %p1776_p13 = scmp.lt.s32.totalorder %s1774_s10, %s1768_s30 }
  0x6e   : > { %v1525_v23 = vld [vmem:[#allocation7] sm:$0xff]   ;;  %v1526_v24 = vld [vmem:[#allocation8 + $0x38] sm:$0xff]   ;;  %v2063_v25 = vld [vmem:[#allocation8 + $0x30] sm:$0xff]   ;;  %p1771_p9 = pneg %p1770_p11 }
  0x6f   : > { %1344 = vmatpush3.bf16.msra.mxu1 %v1519_v8  ;;  %v1203_v27 = vld [vmem:[%s2166_s2] ss:$0 sm:$0xff]  ;;  %p1777_p2 = por %p1776_p13, %p1775_p12 }
  0x70   : > { %1314 = vmatpush3.bf16.msra.mxu0 %v1504_v2  ;;  %1345 = vmatprep.subr.bf16.mxu1 %v1520_v18 }
  0x71   : > { %1315 = vmatprep.subr.bf16.mxu0 %v1505_v3  ;;  %p1778_p5 = pnand %p1777_p2, %p1771_p9 }
  0x73   : > { %1346 = vmatpush3.bf16.msra.mxu1 %v1520_v18 }
  0x74   : > { %1316 = vmatpush3.bf16.msra.mxu0 %v1505_v3  ;;  %1347 = vmatprep.subr.bf16.mxu1 %v1521_v19 }
  0x75   : > { %1317 = vmatprep.subr.bf16.mxu0 %v1506_v5 }
  0x77   : > { %1348 = vmatpush3.bf16.msra.mxu1 %v1521_v19  ;;  %v1528_v19 = vld [vmem:[#allocation8 + $0x28] sm:$0xff]  }
  0x78   : > { %1318 = vmatpush3.bf16.msra.mxu0 %v1506_v5  ;;  %1349 = vmatprep.subr.bf16.mxu1 %v1522_v20 }
  0x79   : > { %1319 = vmatprep.subr.bf16.mxu0 %v1507_v6 }
  0x7b   : > { %1350 = vmatpush3.bf16.msra.mxu1 %v1522_v20  ;;  %v1529_v20 = vld [vmem:[#allocation8 + $0x20] sm:$0xff]  }
  0x7c   : > { %1320 = vmatpush3.bf16.msra.mxu0 %v1507_v6  ;;  %1351 = vmatprep.subr.bf16.mxu1 %v1523_v21 }
  0x7d   : > { %1321 = vmatprep.subr.bf16.mxu0 %v1508_v9 }
  0x7f   : > { %1352 = vmatpush3.bf16.msra.mxu1 %v1523_v21  ;;  %v1530_v21 = vld [vmem:[#allocation8 + $0x18] sm:$0xff]  }
  0x80   : > { %1322 = vmatpush3.bf16.msra.mxu0 %v1508_v9  ;;  %1353 = vmatprep.subr.bf16.mxu1 %v1524_v22 }
  0x81   : > { %1323 = vmatprep.subr.bf16.mxu0 %v1509_v10 }
  0x83   : > { %1354 = vmatpush3.bf16.msra.mxu1 %v1524_v22  ;;  %v1531_v22 = vld [vmem:[#allocation8 + $0x10] sm:$0xff]  }
  0x84   : > { %1324 = vmatpush3.bf16.msra.mxu0 %v1509_v10  ;;  %1355 = vmatprep.subr.bf16.mxu1 %v1525_v23 }
  0x85   : > { %1373 = vmatprep.subr.bf16.mxu0 %v1526_v24 }
  0x87   : > { %1326 = vmatmul.mubr.bf16.vlgmr.msra.gmra.mxu0 %v1511_v11  ;;  %1356 = vmatpush3.bf16.msra.mxu1 %v1525_v23  ;;  %v1532_v23 = vld [vmem:[#allocation8 + $0x8] sm:$0xff]  }
  0x88   : > { %1329 = vmatprep.mubr.bf16.mxu0 %v1512_v12  ;;  %1405 = vmatprep.subr.bf16.mxu1 %v1526_v24 }
  0x89   : > { %1374 = vmatpush3.bf16.msra.mxu0 %v1526_v24 }
  0x8a   : > { %1375 = vmatprep.subr.bf16.mxu0 %v2063_v25 }
  0x8d   : > { %1376 = vmatpush3.bf16.msra.mxu0 %v2063_v25 }
  0x8e   : > { %1377 = vmatprep.subr.bf16.mxu0 %v1528_v19 }
  0x8f   : > { %1330 = vmatmul.mubr.bf16.gmra.mxu0 %v1513_v13 }
  0x90   : > { %1333 = vmatprep.mubr.bf16.mxu0 %v1514_v14 }
  0x91   : > { %1378 = vmatpush3.bf16.msra.mxu0 %v1528_v19 }
  0x92   : > { %1379 = vmatprep.subr.bf16.mxu0 %v1529_v20 }
  0x95   : > { %1380 = vmatpush3.bf16.msra.mxu0 %v1529_v20 }
  0x96   : > { %1381 = vmatprep.subr.bf16.mxu0 %v1530_v21 }
  0x97   : > { %1334 = vmatmul.mubr.bf16.gmra.mxu0 %v1515_v15 }
  0x98   : > { %1337 = vmatprep.mubr.bf16.mxu0 %v1516_v16 }
  0x99   : > { %1382 = vmatpush3.bf16.msra.mxu0 %v1530_v21 }
  0x9a   : > { %1383 = vmatprep.subr.bf16.mxu0 %v1531_v22 }
  0x9d   : > { %1384 = vmatpush3.bf16.msra.mxu0 %v1531_v22 }
  0x9e   : > { %1385 = vmatprep.subr.bf16.mxu0 %v1532_v23 }
  0x9f   : > { %1338 = vmatmul.mubr.bf16.gmra.mxu0 %v1517_v17 }
  0xa1   : > { %1386 = vmatpush3.bf16.msra.mxu0 %v1532_v23 }
 0x147   : > { %v1327_v26 = vpop.f32.mrf.mxu0 }
 0x148   : > { %v522_v32 = vadd.f32 %v1327_v26, %v1203_v27  ;;  %v1220_v26 = vld [vmem:[%s2168_s4] ss:$0 sm:$0xff] }
 0x149   : > { %v513_v28 = vpop.f32.mrf.mxu0 }
 0x14a   : > { %v514_v29 = vadd.f32 %v1203_v27, %v513_v28 }
 0x14b   : > { %v1328_v30 = vpop.f32.mrf.mxu0 }
 0x14c   : > { %v525_v31 = vadd.f32 %v1328_v30, %v1203_v27  ;;  %1534 = vtanh.f32 %v514_v29 }
 0x14d   : > { %v516_v33 = vpop.f32.mrf.mxu0 }
 0x14e   : > { %v517_v34 = vadd.f32 %v1203_v27, %v516_v33  ;;  %1536 = vtanh.f32 %v525_v31 }
 0x14f   : > { %v1331_v35 = vpop.f32.mrf.mxu0 }
 0x150   : > { %1538 = vtanh.f32 %v517_v34  ;;  %v538_v40 = vadd.f32 %v1331_v35, %v1203_v27 }
 0x151   : > { %1540 = vtanh.f32 %v522_v32  ;;  %v529_v36 = vpop.f32.mrf.mxu0 }
 0x152   : > { %v530_v37 = vadd.f32 %v1203_v27, %v529_v36 }
 0x153   : > { %v1332_v38 = vpop.f32.mrf.mxu0 }
 0x154   : > { %v541_v39 = vadd.f32 %v1332_v38, %v1203_v27  ;;  %1542 = vtanh.f32 %v530_v37 }
 0x155   : > { %v532_v41 = vpop.f32.mrf.mxu0 }
 0x156   : > { %v533_v42 = vadd.f32 %v1203_v27, %v532_v41  ;;  %1544 = vtanh.f32 %v541_v39 }
 0x157   : > { %v1335_v43 = vpop.f32.mrf.mxu0 }
 0x158   : > { %1546 = vtanh.f32 %v533_v42  ;;  %v554_v51 = vadd.f32 %v1335_v43, %v1203_v27 }
 0x159   : > { %1548 = vtanh.f32 %v538_v40  ;;  %v545_v44 = vpop.f32.mrf.mxu0  ;;  %v1535_v46 = vpop.eup %1534 }
 0x15a   : > { %v546_v45 = vadd.f32 %v1203_v27, %v545_v44 }
 0x15b   : > { %v1336_v47 = vpop.f32.mrf.mxu0  ;;  %v1537_v48 = vpop.eup %1536 }
 0x15c   : > { %v557_v49 = vadd.f32 %v1336_v47, %v1203_v27  ;;  %1550 = vtanh.f32 %v546_v45 }
 0x15d   : > { %v1539_v50 = vpop.eup %1538  ;;  %v548_v52 = vpop.f32.mrf.mxu0 }
 0x15e   : > { %v1541_v53 = vpop.eup %1540  ;;  %v549_v54 = vadd.f32 %v1203_v27, %v548_v52  ;;  %v609_v55 = vpack.c.bf16 %v1539_v50, %v1535_v46  ;;  %1552 = vtanh.f32 %v557_v49 }
 0x15f   : > { %v1339_v56 = vpop.f32.mrf.mxu0  ;;  %v610_v57 = vpack.c.bf16 %v1537_v48, %v1541_v53 }
 0x160   : > { %1554 = vtanh.f32 %v549_v54  ;;  %1357 = vmatprep.mubr.bf16.mxu1 %v609_v55  ;;  %v570_v1 = vadd.f32 %v1339_v56, %v1203_v27 }
 0x161   : > { %1556 = vtanh.f32 %v554_v51  ;;  %v561_v58 = vpop.f32.mrf.mxu0  ;;  %1358 = vmatmul.mubr.bf16.vlgmr.msra.gmra.mxu1 %v610_v57  ;;  %v1543_v60 = vpop.eup %1542 }
 0x162   : > { %v562_v59 = vadd.f32 %v1203_v27, %v561_v58  ;;  %1413 = vmatpush3.bf16.msra.mxu1 %v1526_v24  ;;  %v1533_v24 = vld [vmem:[#allocation8] sm:$0xff]  }
 0x163   : > { %v1340_v61 = vpop.f32.mrf.mxu0  ;;  %1406 = vmatprep.subr.bf16.mxu1 %v2063_v25  ;;  %v1545_v62 = vpop.eup %1544  ;;  %1387 = vmatprep.subr.bf16.mxu0 %v1533_v24 }
 0x164   : > { %v573_v63 = vadd.f32 %v1340_v61, %v1203_v27  ;;  %1558 = vtanh.f32 %v562_v59  ;;  %1388 = vmatpush3.bf16.msra.mxu0 %v1533_v24 }
 0x165   : > { %v1547_v0 = vpop.eup %1546  ;;  %v564_v2 = vpop.f32.mrf.mxu0 }
 0x166   : > { %v1549_v3 = vpop.eup %1548  ;;  %v565_v4 = vadd.f32 %v1203_v27, %v564_v2  ;;  %v611_v5 = vpack.c.bf16 %v1547_v0, %v1543_v60  ;;  %1414 = vmatpush3.bf16.msra.mxu1 %v2063_v25  ;;  %1560 = vtanh.f32 %v573_v63 }
 0x167   : > { %v612_v6 = vpack.c.bf16 %v1545_v62, %v1549_v3  ;;  %1407 = vmatprep.subr.bf16.mxu1 %v1528_v19 }
 0x168   : > { %1562 = vtanh.f32 %v565_v4  ;;  %1361 = vmatprep.mubr.bf16.mxu1 %v611_v5 }
 0x169   : > { %1564 = vtanh.f32 %v570_v1  ;;  %1362 = vmatmul.mubr.bf16.gmra.mxu1 %v612_v6  ;;  %v1551_v7 = vpop.eup %1550 }
 0x16a   : > { %1415 = vmatpush3.bf16.msra.mxu1 %v1528_v19 }
 0x16b   : > { %v1553_v8 = vpop.eup %1552  ;;  %1408 = vmatprep.subr.bf16.mxu1 %v1529_v20 }
 0x16d   : > { %v1555_v9 = vpop.eup %1554 }
 0x16e   : > { %v1557_v10 = vpop.eup %1556  ;;  %v613_v11 = vpack.c.bf16 %v1555_v9, %v1551_v7  ;;  %1416 = vmatpush3.bf16.msra.mxu1 %v1529_v20 }
 0x16f   : > { %v614_v12 = vpack.c.bf16 %v1553_v8, %v1557_v10  ;;  %1409 = vmatprep.subr.bf16.mxu1 %v1530_v21 }
 0x170   : > { %1365 = vmatprep.mubr.bf16.mxu1 %v613_v11 }
 0x171   : > { %1366 = vmatmul.mubr.bf16.gmra.mxu1 %v614_v12  ;;  %v1559_v13 = vpop.eup %1558 }
 0x172   : > { %1417 = vmatpush3.bf16.msra.mxu1 %v1530_v21 }
 0x173   : > { %v1561_v14 = vpop.eup %1560  ;;  %1410 = vmatprep.subr.bf16.mxu1 %v1531_v22 }
 0x175   : > { %v1563_v15 = vpop.eup %1562 }
 0x176   : > { %v1565_v16 = vpop.eup %1564  ;;  %v615_v17 = vpack.c.bf16 %v1563_v15, %v1559_v13  ;;  %1418 = vmatpush3.bf16.msra.mxu1 %v1531_v22 }
 0x177   : > { %v616_v18 = vpack.c.bf16 %v1561_v14, %v1565_v16  ;;  %1411 = vmatprep.subr.bf16.mxu1 %v1532_v23 }
 0x178   : > { %1369 = vmatprep.mubr.bf16.mxu1 %v615_v17 }
 0x179   : > { %1370 = vmatmul.mubr.bf16.gmra.mxu1 %v616_v18  ;;  %v2078_v18 = vld [vmem:[%s2170_s6] ss:$0 sm:$0xff] }
 0x17a   : > { %1419 = vmatpush3.bf16.msra.mxu1 %v1532_v23 }
 0x17b   : > { %1412 = vmatprep.subr.bf16.mxu1 %v1533_v24 }
 0x17e   : > { %1420 = vmatpush3.bf16.msra.mxu1 %v1533_v24 }
 0x221   : > { %v1359_v25 = vpop.f32.mrf.mxu1 }
 0x222   : > { %v714_v31 = vadd.f32 %v1359_v25, %v1220_v26 }
 0x223   : > { %v705_v27 = vpop.f32.mrf.mxu1 }
 0x224   : > { %v706_v28 = vadd.f32 %v1220_v26, %v705_v27 }
 0x225   : > { %v1360_v29 = vpop.f32.mrf.mxu1 }
 0x226   : > { %v717_v30 = vadd.f32 %v1360_v29, %v1220_v26  ;;  %1566 = vtanh.f32 %v706_v28 }
 0x227   : > { %v708_v32 = vpop.f32.mrf.mxu1 }
 0x228   : > { %v709_v33 = vadd.f32 %v1220_v26, %v708_v32  ;;  %1568 = vtanh.f32 %v717_v30 }
 0x229   : > { %v1363_v34 = vpop.f32.mrf.mxu1 }
 0x22a   : > { %1570 = vtanh.f32 %v709_v33  ;;  %v730_v39 = vadd.f32 %v1363_v34, %v1220_v26 }
 0x22b   : > { %1572 = vtanh.f32 %v714_v31  ;;  %v721_v35 = vpop.f32.mrf.mxu1 }
 0x22c   : > { %v722_v36 = vadd.f32 %v1220_v26, %v721_v35 }
 0x22d   : > { %v1364_v37 = vpop.f32.mrf.mxu1 }
 0x22e   : > { %v733_v38 = vadd.f32 %v1364_v37, %v1220_v26  ;;  %1574 = vtanh.f32 %v722_v36 }
 0x22f   : > { %v724_v40 = vpop.f32.mrf.mxu1 }
 0x230   : > { %v725_v41 = vadd.f32 %v1220_v26, %v724_v40  ;;  %1576 = vtanh.f32 %v733_v38 }
 0x231   : > { %v1367_v42 = vpop.f32.mrf.mxu1 }
 0x232   : > { %1578 = vtanh.f32 %v725_v41  ;;  %v746_v50 = vadd.f32 %v1367_v42, %v1220_v26 }
 0x233   : > { %1580 = vtanh.f32 %v730_v39  ;;  %v737_v43 = vpop.f32.mrf.mxu1  ;;  %v1567_v45 = vpop.eup %1566 }
 0x234   : > { %v738_v44 = vadd.f32 %v1220_v26, %v737_v43 }
 0x235   : > { %v1368_v46 = vpop.f32.mrf.mxu1  ;;  %v1569_v47 = vpop.eup %1568 }
 0x236   : > { %v749_v48 = vadd.f32 %v1368_v46, %v1220_v26  ;;  %1582 = vtanh.f32 %v738_v44 }
 0x237   : > { %v1571_v49 = vpop.eup %1570  ;;  %v740_v51 = vpop.f32.mrf.mxu1 }
 0x238   : > { %v1573_v52 = vpop.eup %1572  ;;  %v741_v53 = vadd.f32 %v1220_v26, %v740_v51  ;;  %v801_v54 = vpack.c.bf16 %v1571_v49, %v1567_v45  ;;  %1584 = vtanh.f32 %v749_v48 }
 0x239   : > { %v1371_v55 = vpop.f32.mrf.mxu1  ;;  %v802_v56 = vpack.c.bf16 %v1569_v47, %v1573_v52 }
 0x23a   : > { %1586 = vtanh.f32 %v741_v53  ;;  %1389 = vmatprep.mubr.bf16.mxu0 %v801_v54  ;;  %v762_v0 = vadd.f32 %v1371_v55, %v1220_v26 }
 0x23b   : > { %1588 = vtanh.f32 %v746_v50  ;;  %v753_v57 = vpop.f32.mrf.mxu1  ;;  %1390 = vmatmul.mubr.bf16.vlgmr.msra.gmra.mxu0 %v802_v56  ;;  %v1575_v59 = vpop.eup %1574 }
 0x23c   : > { %v754_v58 = vadd.f32 %v1220_v26, %v753_v57 }
 0x23d   : > { %v1372_v60 = vpop.f32.mrf.mxu1  ;;  %v1577_v61 = vpop.eup %1576 }
 0x23e   : > { %v765_v62 = vadd.f32 %v1372_v60, %v1220_v26  ;;  %1590 = vtanh.f32 %v754_v58 }
 0x23f   : > { %v1579_v63 = vpop.eup %1578  ;;  %v756_v1 = vpop.f32.mrf.mxu1 }
 0x240   : > { %v1581_v2 = vpop.eup %1580  ;;  %v757_v3 = vadd.f32 %v1220_v26, %v756_v1  ;;  %v803_v4 = vpack.c.bf16 %v1579_v63, %v1575_v59  ;;  %1592 = vtanh.f32 %v765_v62 }
 0x241   : > { %v804_v5 = vpack.c.bf16 %v1577_v61, %v1581_v2 }
 0x242   : > { %1594 = vtanh.f32 %v757_v3  ;;  %1393 = vmatprep.mubr.bf16.mxu0 %v803_v4 }
 0x243   : > { %1596 = vtanh.f32 %v762_v0  ;;  %1394 = vmatmul.mubr.bf16.gmra.mxu0 %v804_v5  ;;  %v1583_v6 = vpop.eup %1582 }
 0x245   : > { %v1585_v7 = vpop.eup %1584 }
 0x247   : > { %v1587_v8 = vpop.eup %1586 }
 0x248   : > { %v1589_v9 = vpop.eup %1588  ;;  %v805_v10 = vpack.c.bf16 %v1587_v8, %v1583_v6 }
 0x249   : > { %v806_v11 = vpack.c.bf16 %v1585_v7, %v1589_v9 }
 0x24a   : > { %1397 = vmatprep.mubr.bf16.mxu1 %v805_v10 }
 0x24b   : > { %1398 = vmatmul.mubr.bf16.vlgmr.msra.gmra.mxu1 %v806_v11  ;;  %v1591_v12 = vpop.eup %1590 }
 0x24d   : > { %v1593_v13 = vpop.eup %1592 }
 0x24f   : > { %v1595_v14 = vpop.eup %1594 }
 0x250   : > { %v1597_v15 = vpop.eup %1596  ;;  %v807_v16 = vpack.c.bf16 %v1595_v14, %v1591_v12 }
 0x251   : > { %v808_v17 = vpack.c.bf16 %v1593_v13, %v1597_v15 }
 0x252   : > { %1401 = vmatprep.mubr.bf16.mxu1 %v807_v16 }
 0x253   : > { %1402 = vmatmul.mubr.bf16.gmra.mxu1 %v808_v17 }
 0x2fb   : > { %v1391_v19 = vpop.f32.mrf.mxu0 }
 0x2fc   : > { %v906_v20 = vadd.f32 %v1391_v19, %v2078_v18 }
 0x2fd   : > { %v897_v21 = vpop.f32.mrf.mxu0 }
 0x2fe   : > { %v1240_v22 = vmul.f32 -1.442695, %v906_v20  ;;  %v898_v23 = vadd.f32 %v2078_v18, %v897_v21 }
 0x2ff   : > { %v1392_v24 = vpop.f32.mrf.mxu0 }
 0x300   : > { %1598 = vpow2.f32 %v1240_v22  ;;  %v1238_v25 = vmul.f32 -1.442695, %v898_v23  ;;  %v909_v26 = vadd.f32 %v1392_v24, %v2078_v18 }
 0x301   : > { %v900_v27 = vpop.f32.mrf.mxu0 }
 0x302   : > { %1600 = vpow2.f32 %v1238_v25  ;;  %v1241_v28 = vmul.f32 -1.442695, %v909_v26  ;;  %v901_v29 = vadd.f32 %v2078_v18, %v900_v27 }
 0x303   : > { %v1395_v30 = vpop.f32.mrf.mxu0 }
 0x304   : > { %1602 = vpow2.f32 %v1241_v28  ;;  %v1239_v31 = vmul.f32 -1.442695, %v901_v29  ;;  %v922_v32 = vadd.f32 %v1395_v30, %v2078_v18 }
 0x305   : > { %v913_v33 = vpop.f32.mrf.mxu0 }
 0x306   : > { %1604 = vpow2.f32 %v1239_v31  ;;  %v1244_v34 = vmul.f32 -1.442695, %v922_v32  ;;  %v914_v35 = vadd.f32 %v2078_v18, %v913_v33 }
 0x307   : > { %v1396_v36 = vpop.f32.mrf.mxu0 }
 0x308   : > { %1606 = vpow2.f32 %v1244_v34  ;;  %v1242_v37 = vmul.f32 -1.442695, %v914_v35  ;;  %v925_v38 = vadd.f32 %v1396_v36, %v2078_v18 }
 0x309   : > { %v916_v39 = vpop.f32.mrf.mxu0 }
 0x30a   : > { %1608 = vpow2.f32 %v1242_v37  ;;  %v1245_v40 = vmul.f32 -1.442695, %v925_v38  ;;  %v917_v41 = vadd.f32 %v2078_v18, %v916_v39 }
 0x30b   : > { %v1399_v42 = vpop.f32.mrf.mxu1 }
 0x30c   : > { %1610 = vpow2.f32 %v1245_v40  ;;  %v1243_v43 = vmul.f32 -1.442695, %v917_v41  ;;  %v938_v44 = vadd.f32 %v1399_v42, %v2078_v18 }
 0x30d   : > { %v1599_v45 = vpop.eup %1598  ;;  %v929_v46 = vpop.f32.mrf.mxu1 }
 0x30e   : > { %v1010_v47 = vadd.f32 1.0, %v1599_v45  ;;  %1612 = vpow2.f32 %v1243_v43  ;;  %v1248_v48 = vmul.f32 -1.442695, %v938_v44  ;;  %v930_v49 = vadd.f32 %v2078_v18, %v929_v46 }
 0x30f   : > { %v1601_v50 = vpop.eup %1600  ;;  %v1400_v51 = vpop.f32.mrf.mxu1 }
 0x310   : > { %1614 = vrcp.f32 %v1010_v47  ;;  %v1008_v52 = vadd.f32 1.0, %v1601_v50  ;;  %v1246_v53 = vmul.f32 -1.442695, %v930_v49  ;;  %v941_v54 = vadd.f32 %v1400_v51, %v2078_v18 }
 0x311   : > { %v1603_v55 = vpop.eup %1602  ;;  %1616 = vpow2.f32 %v1248_v48  ;;  %v932_v56 = vpop.f32.mrf.mxu1 }
 0x312   : > { %1618 = vrcp.f32 %v1008_v52  ;;  %v1011_v57 = vadd.f32 1.0, %v1603_v55  ;;  %v1249_v58 = vmul.f32 -1.442695, %v941_v54  ;;  %v933_v59 = vadd.f32 %v2078_v18, %v932_v56 }
 0x313   : > { %v1605_v60 = vpop.eup %1604  ;;  %1620 = vpow2.f32 %v1246_v53  ;;  %v1403_v61 = vpop.f32.mrf.mxu1 }
 0x314   : > { %1622 = vrcp.f32 %v1011_v57  ;;  %v1009_v62 = vadd.f32 1.0, %v1605_v60  ;;  %v1247_v63 = vmul.f32 -1.442695, %v933_v59  ;;  %v954_v0 = vadd.f32 %v1403_v61, %v2078_v18 }
 0x315   : > { %v1607_v1 = vpop.eup %1606  ;;  %1624 = vpow2.f32 %v1249_v58  ;;  %v945_v2 = vpop.f32.mrf.mxu1 }
 0x316   : > { %1626 = vrcp.f32 %v1009_v62  ;;  %v1014_v3 = vadd.f32 1.0, %v1607_v1  ;;  %v1252_v4 = vmul.f32 -1.442695, %v954_v0  ;;  %v946_v5 = vadd.f32 %v2078_v18, %v945_v2 }
 0x317   : > { %v1609_v6 = vpop.eup %1608  ;;  %1628 = vpow2.f32 %v1247_v63  ;;  %v1404_v7 = vpop.f32.mrf.mxu1 }
 0x318   : > { %1630 = vrcp.f32 %v1014_v3  ;;  %v1012_v8 = vadd.f32 1.0, %v1609_v6  ;;  %v1250_v9 = vmul.f32 -1.442695, %v946_v5  ;;  %v957_v10 = vadd.f32 %v1404_v7, %v2078_v18 }
 0x319   : > { %v1611_v11 = vpop.eup %1610  ;;  %1632 = vpow2.f32 %v1252_v4  ;;  %v948_v12 = vpop.f32.mrf.mxu1 }
 0x31a   : > { %1634 = vrcp.f32 %v1012_v8  ;;  %v1015_v13 = vadd.f32 1.0, %v1611_v11  ;;  %v1253_v14 = vmul.f32 -1.442695, %v957_v10  ;;  %v949_v15 = vadd.f32 %v2078_v18, %v948_v12 }
 0x31b   : > { %v1613_v16 = vpop.eup %1612  ;;  %1636 = vpow2.f32 %v1250_v9 }
 0x31c   : > { %1638 = vrcp.f32 %v1015_v13  ;;  %v1013_v17 = vadd.f32 1.0, %v1613_v16  ;;  %v1251_v19 = vmul.f32 -1.442695, %v949_v15 }
 0x31d   : > { %v1615_v20 = vpop.eup %1614  ;;  %1640 = vpow2.f32 %v1253_v14 }
 0x31e   : > { %v1617_v21 = vpop.eup %1616  ;;  %1058 = vst [vmem:[%s2097_s21 + $0x10] sm:$0xff] %v1615_v20  ;;  %1642 = vrcp.f32 %v1013_v17 }
 0x31f   : > { %v1619_v22 = vpop.eup %1618  ;;  %v1018_v23 = vadd.f32 1.0, %v1617_v21  ;;  %1644 = vpow2.f32 %v1251_v19 }
 0x320   : > { %v1621_v18 = vpop.eup %1620  ;;  %1056 = vst [vmem:[%s2097_s21] sm:$0xff] %v1619_v22 }
 0x321   : > { %v1623_v24 = vpop.eup %1622  ;;  %1646 = vrcp.f32 %v1018_v23  ;;  %v1016_v25 = vadd.f32 1.0, %v1621_v18 }
 0x322   : > { %v1625_v26 = vpop.eup %1624  ;;  %1059 = vst [vmem:[%s2097_s21 + $0x18] sm:$0xff] %v1623_v24 }
 0x323   : > { %v1627_v27 = vpop.eup %1626  ;;  %1648 = vrcp.f32 %v1016_v25  ;;  %v1019_v28 = vadd.f32 1.0, %v1625_v26 }
 0x324   : > { %v1629_v29 = vpop.eup %1628  ;;  %1057 = vst [vmem:[%s2097_s21 + $0x8] sm:$0xff] %v1627_v27 }
 0x325   : > { %v1631_v30 = vpop.eup %1630  ;;  %1650 = vrcp.f32 %v1019_v28  ;;  %v1017_v31 = vadd.f32 1.0, %v1629_v29 }
 0x326   : > { %v1633_v32 = vpop.eup %1632  ;;  %1062 = vst [vmem:[%s2097_s21 + $0x30] sm:$0xff] %v1631_v30 }
 0x327   : > { %v1635_v33 = vpop.eup %1634  ;;  %1652 = vrcp.f32 %v1017_v31  ;;  %v1022_v34 = vadd.f32 1.0, %v1633_v32 }
 0x328   : > { %v1637_v35 = vpop.eup %1636  ;;  %1060 = vst [vmem:[%s2097_s21 + $0x20] sm:$0xff] %v1635_v33 }
 0x329   : > { %v1639_v36 = vpop.eup %1638  ;;  %1654 = vrcp.f32 %v1022_v34  ;;  %v1020_v37 = vadd.f32 1.0, %v1637_v35 }
 0x32a   : > { %v1641_v38 = vpop.eup %1640  ;;  %1063 = vst [vmem:[%s2097_s21 + $0x38] sm:$0xff] %v1639_v36 }
 0x32b   : > { %v1643_v39 = vpop.eup %1642  ;;  %1656 = vrcp.f32 %v1020_v37  ;;  %v1023_v40 = vadd.f32 1.0, %v1641_v38 }
 0x32c   : > { %v1645_v41 = vpop.eup %1644  ;;  %1061 = vst [vmem:[%s2097_s21 + $0x28] sm:$0xff] %v1643_v39 }
 0x32d   : > { %1658 = vrcp.f32 %v1023_v40  ;;  %v1021_v42 = vadd.f32 1.0, %v1645_v41 }
 0x32e   : > { %v1647_v43 = vpop.eup %1646 }
 0x32f   : > { %1066 = vst [vmem:[%s2097_s21 + $0x50] sm:$0xff] %v1647_v43  ;;  %1660 = vrcp.f32 %v1021_v42 }
 0x330   : > { %v1649_v44 = vpop.eup %1648 }
 0x331   : > { %1064 = vst [vmem:[%s2097_s21 + $0x40] sm:$0xff] %v1649_v44 }
 0x332   : > { %v1651_v45 = vpop.eup %1650 }
 0x333   : > { %1067 = vst [vmem:[%s2097_s21 + $0x58] sm:$0xff] %v1651_v45 }
 0x334   : > { %v1653_v46 = vpop.eup %1652 }
 0x335   : > { %1065 = vst [vmem:[%s2097_s21 + $0x48] sm:$0xff] %v1653_v46 }
 0x336   : > { %v1655_v47 = vpop.eup %1654 }
 0x337   : > { %1070 = vst [vmem:[%s2097_s21 + $0x70] sm:$0xff] %v1655_v47 }
 0x338   : > { %v1657_v48 = vpop.eup %1656 }
 0x339   : > { %1068 = vst [vmem:[%s2097_s21 + $0x60] sm:$0xff] %v1657_v48 }
 0x33a   : > { %v1659_v49 = vpop.eup %1658 }
 0x33b   : > { %1071 = vst [vmem:[%s2097_s21 + $0x78] sm:$0xff] %v1659_v49 }
 0x33c   : > { %v1661_v50 = vpop.eup %1660 }
 0x33d   : > { %1069 = vst [vmem:[%s2097_s21 + $0x68] sm:$0xff] %v1661_v50 }
 0x33e   : > { %1781 = shalt.err (!%p1778_p5)
}
 0x33f   : > { %s1782_s13 = scalar_lea.hbm %s2118_s16, 2048  ;;  %s1786_s11 = scalar_lea.hbm %s2171_s7, 8192 }
 0x340   : > { %p1783_p6 = scmp.ne.s32.totalorder %s2118_s16, %s1782_s13  ;;  %p1787_p0 = scmp.lt.s32.totalorder %s2118_s16, %s2171_s7 }
 0x341   : > { %p1788_p10 = scmp.lt.s32.totalorder %s1786_s11, %s1782_s13 }
 0x342   : > { %p1784_p4 = pnand %p1783_p6, %p2194_p1 }
 0x343   : > { %p1789_p3 = por %p1788_p10, %p1787_p0 }
 0x344   : > { %p1785_p8 = pneg %p1784_p4 }
 0x346   : > { %p1790_p7 = pnand %p1789_p3, %p1785_p8 }
 0x348   : > { %1793 = shalt.err (!%p1790_p7)
}
 0x349   : > { %s1849_s23 = smov 128   ;;  %s1850_s1 = smov 8  }
 0x34a   : > { %1435 = dma.vmem_to_hbm [thread:$0]  (%p2194_p1), %s2120_s18, 2048, %s2118_s16, %s1073_s29, %s1849_s23, %s1849_s23, %s1850_s1  }
 0x34b PF: > { %p1462_p11 = scmp.ge.s32.totalorder %s1840_s27, 2  ;;  %s1101_s30 = sand.u32 1, %s1828_s24  }
 0x34c   : > { %p2195_p9 = scmp.ne.s32.totalorder %s2180_s8, 0  ;;  %s1102_s28 = scalar_lea.sflag [#allocation4], %s1101_s30 }
 0x34e   : > { %p1452_p12 = pnand %p1462_p11, %p2195_p9 }
 0x350   : > { %p1453_p13 = pneg %p1452_p12 }
 0x352   : > { %1823 = dma.done.wait (%p1453_p13), %s1102_s28, 2048  }
 0x353   : > { %1825 = vsyncadd (%p1453_p13), %s1102_s28, 4294965248  ;;  %p22_p2 = scmp.ge.s32.totalorder %s1979_s14, 6   ;;  %s2196_s24 = smov %s1832_s25 }
 0x354   : > { %s2197_s25 = smov %s1836_s26  ;;  %s2198_s26 = smov %s1989_s17 }
 0x355   : > { %s2199_s27 = smov %s1979_s14  ;;  %24 = sbr.rel (!%p22_p2) target bundleno = 9 (0x9), region = 105 }
 0x35a   :  { %1107 = vsyncpa [#allocation3], 1 }
 0x35b   :  { %1109 = vsyncpa [#allocation3 + $0x1], 1 }
 0x35c   :  { %1110 = vsyncpa [#allocation6], 1 }
 0x35d   :  { %1111 = vsyncpa [#allocation9], 1 }
 0x35e   :  { %1112 = vsyncpa [#allocation4], 1 }
 0x35f   :  { %1114 = vsyncpa [#allocation4 + $0x1], 1 }

</bundles_post_ra>
